<compile_context>
chip_gen: v7x
topology: tpu7x:2x2x1
jax: 0.10.0
libtpu: 0.0.40
codegen_flags: <defaults>
</compile_context>

<pallas_src>
import functools

import numpy as np
import jax
import jax.numpy as jnp
from jax.experimental import pallas as pl
from jax.experimental.pallas import tpu as pltpu


def _xloss_kernel(probas_ref, preds_ref, labels_ref, pg_ref, out_ref, acc_ref,
                  *, batch, tile_b, steps_per, need_mask):
    p = pl.program_id(0)          # parallel partition (megacore on v7x)
    s = pl.program_id(1)          # batch-tile step within the partition

    @pl.when(s == 0)
    def _init():
        acc_ref[0] = jnp.float32(0.0)

    # Upcast in-kernel (keep bf16 in HBM; subtract AFTER the f32 upcast to avoid
    # bf16 catastrophic cancellation in the squared error).
    probas = probas_ref[...].astype(jnp.float32)   # (L, TB)
    preds = preds_ref[...].astype(jnp.float32)     # (L, TB)
    labels = labels_ref[...].astype(jnp.float32)   # (1, TB) -> broadcasts over L
    pg = pg_ref[...].astype(jnp.float32)           # (L, 1)  -> broadcasts over B

    # Fused elementwise pass:
    #   recon term:  probas * (pred - label)^2
    #   reg   term: -pg * log(probas)     (the +pg*log(pg) piece is a constant,
    #                                      added in the wrapper)
    err = preds - labels
    term = probas * (err * err) - pg * jnp.log(probas)

    if need_mask:
        # Ragged batch tail: zero out lanes past the real batch size.
        col0 = (p * steps_per + s) * tile_b
        lane = jax.lax.broadcasted_iota(jnp.int32, (1, tile_b), 1)
        term = jnp.where((lane + col0) < batch, term, 0.0)

    acc_ref[0] = acc_ref[0] + jnp.sum(term)

    @pl.when(s == pl.num_programs(1) - 1)
    def _fin():
        # Lane-dense per-partition partial sum (wrapper reads [:, 0, 0]).
        out_ref[...] = jnp.full(out_ref.shape, acc_ref[0], jnp.float32)


def xloss(probas, preds, labels, p_g):
    """probas, preds: (L, B); labels: (B,); p_g: (max_layers,). Returns scalar f32."""
    L, B = probas.shape

    # Lane-dense batch tile.
    if B < 128:
        tile_b = B                    # full-lane block (allowed: equals array dim)
    elif B % 128 == 0:
        tile_b = min(B, 1024)
    else:
        tile_b = 128                  # ragged tail handled with an in-kernel mask

    steps = pl.cdiv(B, tile_b)
    # v7x has 2 TensorCores; split the batch-tile loop across them when it divides
    # evenly.  Harmless (single partition / near-zero cost) on v5e / v6e.
    n_par = 2 if (steps >= 2 and steps % 2 == 0) else 1
    steps_per = steps // n_par
    need_mask = (steps * tile_b != B)

    labels2 = labels.reshape(1, B)                     # keep input dtype (no HBM copy)
    pgl = p_g[:L].astype(jnp.float32)
    pg2 = pgl.reshape(L, 1)

    kernel = functools.partial(
        _xloss_kernel, batch=B, tile_b=tile_b, steps_per=steps_per,
        need_mask=need_mask)

    col_map = lambda p, s: (0, p * steps_per + s)

    partials = pl.pallas_call(
        kernel,
        out_shape=jax.ShapeDtypeStruct((n_par, 8, 128), jnp.float32),
        grid_spec=pltpu.PrefetchScalarGridSpec(
            num_scalar_prefetch=0,
            grid=(n_par, steps_per),
            in_specs=[
                pl.BlockSpec((L, tile_b), col_map),              # probas
                pl.BlockSpec((L, tile_b), col_map),              # preds
                pl.BlockSpec((1, tile_b), col_map),              # labels
                pl.BlockSpec((L, 1), lambda p, s: (0, 0)),       # p_g[:L]
            ],
            out_specs=pl.BlockSpec((1, 8, 128), lambda p, s: (p, 0, 0)),
            scratch_shapes=[pltpu.SMEM((1,), jnp.float32)],
        ),
        compiler_params=pltpu.CompilerParams(
            dimension_semantics=("parallel", "arbitrary")),
    )(probas, preds, labels2, pg2)

    # Data-independent KL constant: sum_l pg[l]*log(pg[l]) (the /B cancels the batch
    # sum).  xlogy-style guard matches PyTorch KLDivLoss behaviour at pg == 0.
    const_term = jnp.sum(jnp.where(pgl > 0, pgl * jnp.log(pgl), 0.0))

    total = jnp.sum(partials[:, 0, 0])
    return total * (1.0 / B) + const_term


def xloss_ref(probas, preds, labels, p_g):
    """Pure-JAX reference (same math as the PyTorch module with MSE loss_fn)."""
    probas = probas.astype(jnp.float32)
    preds = preds.astype(jnp.float32)
    labels = labels.astype(jnp.float32)
    L, B = probas.shape
    recon = jnp.sum(jnp.mean(probas * (preds - labels[None, :]) ** 2, axis=1))
    pgl = p_g[:L].astype(jnp.float32)
    reg = jnp.sum(pgl[None, :] * (jnp.log(pgl)[None, :] - jnp.log(probas.T))) / B
    return recon + reg


def make_p_g(lambda_p: float, max_layers: int) -> jnp.ndarray:
    # Deterministic geometric prior, exactly as RegularizationLoss.__init__.
    pg = np.zeros((max_layers,), np.float32)
    not_halted = 1.0
    for k in range(max_layers):
        pg[k] = lambda_p * not_halted
        not_halted *= (1.0 - lambda_p)
    return jnp.asarray(pg)


if __name__ == "__main__":
    lambda_p = 0.2
    max_layers = 8
    p_g = make_p_g(lambda_p, max_layers)

    key = jax.random.PRNGKey(0)
    k1, k2, k3, k4, k5, k6 = jax.random.split(key, 6)

    # Case 1: tiny shipped configuration (L=8, B=16), float32, single block.
    L, B = 8, 16
    probas = jax.nn.softmax(jax.random.normal(k1, (L, B), jnp.float32), axis=0)
    preds = jax.random.normal(k2, (L, B), jnp.float32)
    labels = jax.random.normal(k3, (B,), jnp.float32)

    out = jax.block_until_ready(xloss(probas, preds, labels, p_g))
    ref = jax.block_until_ready(xloss_ref(probas, preds, labels, p_g))
    assert np.allclose(np.asarray(out), np.asarray(ref), rtol=1e-5, atol=1e-5), (out, ref)

    # Case 2: bf16 inputs, ragged batch -> exercises the tiled grid, in-kernel mask,
    # accumulator, and (on v7x) the megacore split of the batch loop.
    L2, B2 = 8, 1000
    probas2 = jax.nn.softmax(
        jax.random.normal(k4, (L2, B2), jnp.float32), axis=0).astype(jnp.bfloat16)
    preds2 = jax.random.normal(k5, (L2, B2), jnp.float32).astype(jnp.bfloat16)
    labels2 = jax.random.normal(k6, (B2,), jnp.float32).astype(jnp.bfloat16)

    out2 = jax.block_until_ready(xloss(probas2, preds2, labels2, p_g))
    ref2 = jax.block_until_ready(xloss_ref(probas2, preds2, labels2, p_g))
    assert np.allclose(np.asarray(out2), np.asarray(ref2), rtol=2e-4, atol=2e-4), (out2, ref2)

    print("KERNEL_OK")
</pallas_src>

<mosaic_0001>
module attributes {stable_mosaic.version = 11 : i64} {
  func.func @_xloss_kernel(%arg0: i32, %arg1: i32, %arg2: memref<8x16xf32, #tpu.memory_space<vmem>>, %arg3: memref<8x16xf32, #tpu.memory_space<vmem>>, %arg4: memref<1x16xf32, #tpu.memory_space<vmem>>, %arg5: memref<8x1xf32, #tpu.memory_space<vmem>>, %arg6: memref<1x8x128xf32, #tpu.memory_space<vmem>>, %arg7: memref<1xf32, #tpu.memory_space<smem>>) attributes {dimension_semantics = [#tpu.dimension_semantics<parallel>, #tpu.dimension_semantics<arbitrary>], iteration_bounds = array<i64: 1, 1>, scalar_prefetch = 0 : i64, scratch_operands = 1 : i64, tpu.core_type = #tpu.core_type<tc>, window_params = [{transform_indices = @transform_0, window_bounds = array<i64: 8, 16>}, {transform_indices = @transform_1, window_bounds = array<i64: 8, 16>}, {transform_indices = @transform_2, window_bounds = array<i64: 1, 16>}, {pipeline_mode = #tpu.pipeline_mode<synchronous>, transform_indices = @transform_3, window_bounds = array<i64: 8, 1>}, {transform_indices = @transform_4, window_bounds = array<i64: 1, 8, 128>}]} {
    %c0_i32 = arith.constant 0 : i32
    %0 = arith.cmpi eq, %arg1, %c0_i32 : i32
    %1 = arith.extui %0 : i1 to i32
    %c0_i32_0 = arith.constant 0 : i32
    %2 = arith.cmpi ne, %1, %c0_i32_0 : i32
    scf.if %2 {
      %cst_12 = arith.constant 0.000000e+00 : f32
      %c0_13 = arith.constant 0 : index
      %25 = memref.load %arg7[%c0_13] : memref<1xf32, #tpu.memory_space<smem>>
      memref.store %cst_12, %arg7[%c0_13] : memref<1xf32, #tpu.memory_space<smem>>
    } else {
    }
    %c0 = arith.constant 0 : index
    %c0_1 = arith.constant 0 : index
    %3 = vector.load %arg2[%c0, %c0_1] : memref<8x16xf32, #tpu.memory_space<vmem>>, vector<8x16xf32>
    %c0_2 = arith.constant 0 : index
    %c0_3 = arith.constant 0 : index
    %4 = vector.load %arg3[%c0_2, %c0_3] : memref<8x16xf32, #tpu.memory_space<vmem>>, vector<8x16xf32>
    %c0_4 = arith.constant 0 : index
    %c0_5 = arith.constant 0 : index
    %5 = vector.load %arg4[%c0_4, %c0_5] : memref<1x16xf32, #tpu.memory_space<vmem>>, vector<1x16xf32>
    %c0_6 = arith.constant 0 : index
    %c0_7 = arith.constant 0 : index
    %6 = vector.load %arg5[%c0_6, %c0_7] : memref<8x1xf32, #tpu.memory_space<vmem>>, vector<8x1xf32>
    %7 = vector.broadcast %5 : vector<1x16xf32> to vector<8x16xf32>
    %8 = arith.subf %4, %7 : vector<8x16xf32>
    %9 = arith.mulf %8, %8 : vector<8x16xf32>
    %10 = arith.mulf %3, %9 : vector<8x16xf32>
    %11 = math.log %3 : vector<8x16xf32>
    %12 = vector.broadcast %6 : vector<8x1xf32> to vector<8x16xf32>
    %13 = arith.mulf %12, %11 : vector<8x16xf32>
    %14 = arith.subf %10, %13 : vector<8x16xf32>
    %c0_8 = arith.constant 0 : index
    %15 = memref.load %arg7[%c0_8] : memref<1xf32, #tpu.memory_space<smem>>
    %16 = vector.shape_cast %14 : vector<8x16xf32> to vector<1x8x16xf32>
    %cst = arith.constant dense<0.000000e+00> : vector<1xf32>
    %17 = vector.multi_reduction <add>, %16, %cst [1, 2] : vector<1x8x16xf32> to vector<1xf32>
    %18 = vector.shape_cast %17 : vector<1xf32> to vector<1x1x1xf32>
    %19 = vector.extract %18[0, 0, 0] : f32 from vector<1x1x1xf32>
    %20 = arith.addf %15, %19 : f32
    %c0_9 = arith.constant 0 : index
    %21 = memref.load %arg7[%c0_9] : memref<1xf32, #tpu.memory_space<smem>>
    memref.store %20, %arg7[%c0_9] : memref<1xf32, #tpu.memory_space<smem>>
    %c0_i32_10 = arith.constant 0 : i32
    %22 = arith.cmpi eq, %arg1, %c0_i32_10 : i32
    %23 = arith.extui %22 : i1 to i32
    %c0_i32_11 = arith.constant 0 : i32
    %24 = arith.cmpi ne, %23, %c0_i32_11 : i32
    scf.if %24 {
      %c0_12 = arith.constant 0 : index
      %25 = memref.load %arg7[%c0_12] : memref<1xf32, #tpu.memory_space<smem>>
      %26 = vector.broadcast %25 : f32 to vector<1x8x128xf32>
      %c0_13 = arith.constant 0 : index
      %c0_14 = arith.constant 0 : index
      %c0_15 = arith.constant 0 : index
      %27 = vector.load %arg6[%c0_13, %c0_14, %c0_15] : memref<1x8x128xf32, #tpu.memory_space<vmem>>, vector<1x8x128xf32>
      tpu.vector_store %arg6[%c0_13, %c0_14, %c0_15], %26 {strides = array<i32>} : memref<1x8x128xf32, #tpu.memory_space<vmem>>, vector<1x8x128xf32>,
    } else {
    }
    return
  }
  func.func @transform_0(%arg0: i32, %arg1: i32) -> (i32, i32) {
    %c1_i32 = arith.constant 1 : i32
    %0 = arith.muli %arg0, %c1_i32 : i32
    %1 = arith.addi %0, %arg1 : i32
    %c0_i32 = arith.constant 0 : i32
    %c0_i32_0 = arith.constant 0 : i32
    return %c0_i32, %1 : i32, i32
  }
  func.func @transform_1(%arg0: i32, %arg1: i32) -> (i32, i32) {
    %c1_i32 = arith.constant 1 : i32
    %0 = arith.muli %arg0, %c1_i32 : i32
    %1 = arith.addi %0, %arg1 : i32
    %c0_i32 = arith.constant 0 : i32
    %c0_i32_0 = arith.constant 0 : i32
    return %c0_i32, %1 : i32, i32
  }
  func.func @transform_2(%arg0: i32, %arg1: i32) -> (i32, i32) {
    %c1_i32 = arith.constant 1 : i32
    %0 = arith.muli %arg0, %c1_i32 : i32
    %1 = arith.addi %0, %arg1 : i32
    %c0_i32 = arith.constant 0 : i32
    %c0_i32_0 = arith.constant 0 : i32
    return %c0_i32, %1 : i32, i32
  }
  func.func @transform_3(%arg0: i32, %arg1: i32) -> (i32, i32) {
    %c0_i32 = arith.constant 0 : i32
    %c0_i32_0 = arith.constant 0 : i32
    %c0_i32_1 = arith.constant 0 : i32
    return %c0_i32, %c0_i32_0 : i32, i32
  }
  func.func @transform_4(%arg0: i32, %arg1: i32) -> (i32, i32, i32) {
    %c0_i32 = arith.constant 0 : i32
    %c0_i32_0 = arith.constant 0 : i32
    %c0_i32_1 = arith.constant 0 : i32
    return %arg0, %c0_i32, %c0_i32_0 : i32, i32, i32
  }
}

</mosaic_0001>

<bundles_post_ra>
// kernel: tpu_custom_call.1
= control target key start
LH: loop header
LB: loop body
LE: loop exit
PB: predicated region body
PF: predicated region fallthrough
CT: control target
= control target key end

     0   :  { %9 = vsyncpa [#allocation4], 0  ;;  %s256_s0 = inlined_call_operand.vmem [shape: f32[8,16], index: 0, kind: input, shape index: {}]   ;;  %s257_s1 = inlined_call_operand.hbm [shape: f32[8,16], index: 1, kind: input, shape index: {}]   ;;  %s258_s2 = inlined_call_operand.vmem [shape: f32[1,16], index: 2, kind: input, shape index: {}]   ;;  %s259_s3 = inlined_call_operand.vmem [shape: f32[8,1], index: 3, kind: input, shape index: {}]   ;;  %s260_s4 = inlined_call_operand.hbm [shape: f32[1,8,128], index: 4, kind: output, shape index: {}]  }
   0x1   :  { %10 = vsyncpa [#allocation5], 0  ;;  %s195_s15 = smov [#allocation3]   ;;  %s147_s19 = scalar_lea.hbm %s257_s1, 128 }
   0x2   :  { %s28_s16 = sshll.u32 %s195_s15, 4  ;;  %p148_p0 = scmp.ne.s32.totalorder %s257_s1, %s147_s19  ;;  %s29_s16 = int_to_ptr.vmem [resolvable:$true] %s28_s16 }
   0x3   :  { %p151_p1 = scmp.lt.u32.totalorder %s147_s19, %s257_s1 }
   0x5   :  { %p153_p2 = pnand %p151_p1, %p148_p0 }
   0x7   :  { %156 = shalt.err (!%p153_p2)
}
   0x8   :  { %s157_s24 = scalar_lea.vmem %s29_s16, 128  ;;  %p162_p4 = scmp.lt.s32.totalorder %s29_s16, %s29_s16 }
   0x9   :  { %p158_p3 = scmp.ne.s32.totalorder %s29_s16, %s157_s24  ;;  %p163_p5 = scmp.lt.s32.totalorder %s157_s24, %s157_s24 }
   0xb   :  { %p164_p6 = por %p163_p5, %p162_p4 }
   0xd   :  { %p165_p7 = pnand %p164_p6, %p158_p3 }
   0xf   :  { %168 = shalt.err (!%p165_p7)
}
  0x10   :  { %31 = dma.hbm_to_vmem [thread:$0]  %s257_s1, 128, %s29_s16, [#allocation4]  }
  0x11   :  { %191 = dma.done.wait [#allocation4], 128  }
  0x12   :  { %192 = vsyncadd [#allocation4], 4294967168  ;;  %v196_v0 = vmov 0   ;;  %v74_v1 = vld [vmem:[%s259_s3] sm:$0xff]  ;;  %vm94_vm0 = vcmask 130048  }
  0x13   :  { %144 = vset.pattern.permute.xlu0 %v196_v0  ;;  %v71_v2 = vld [vmem:[%s256_s0] sm:$0xff]  ;;  %s197_s0 = smov [#allocation6]  }
  0x14   :  { %88 = vperm.xlu0 %144, %v74_v1   ;;  %145 = vlog2.f32 %v71_v2  ;;  %v72_v3 = vld [vmem:[#allocation3] sm:$0xff]  ;;  %s120_s1 = sshll.u32 %s197_s0, 4  ;;  %s121_s1 = int_to_ptr.vmem [resolvable:$true] %s120_s1 }
  0x15   :  { %v138_v4 = vld [vmem:[%s258_s2] ss:$0 sm:$0xff]  ;;  %s169_s3 = scalar_lea.vmem %s121_s1, 128  ;;  %p174_p9 = scmp.lt.s32.totalorder %s121_s1, %s121_s1 }
  0x16   :  { %v81_v5 = vsub.f32 %v72_v3, %v138_v4  ;;  %p170_p8 = scmp.ne.s32.totalorder %s121_s1, %s169_s3  ;;  %p175_p10 = scmp.lt.s32.totalorder %s169_s3, %s169_s3 }
  0x18   :  { %v82_v7 = vmul.f32 %v81_v5, %v81_v5  ;;  %p176_p11 = por %p175_p10, %p174_p9 }
  0x1a   :  { %v83_v9 = vmul.f32 %v82_v7, %v71_v2  ;;  %p177_p12 = pnand %p176_p11, %p170_p8 }
  0x1e   :  { %v146_v6 = vpop.eup %145 }
  0x1f   :  { %v85_v8 = vmul.f32 0.6931472, %v146_v6 }
  0x93   :  { %v89_v10 = vpop.permute.xlu0 %88 }
  0x94   :  { %v91_v11 = vmul.f32 %v89_v10, %v85_v8 }
  0x96   :  { %v92_v12 = vsub.f32 %v83_v9, %v91_v11 }
  0x98   :  { %v95_v13 = vsel %vm94_vm0, %v92_v12, 0.0 }
  0x99   :  { %96 = vadd.xlane.f32.xlu0 %v95_v13 }
 0x126   :  { %v97_v14 = vpop.xlane.xlu0 %96 }
 0x127   :  { %v98_v15 = vrot.slane %v97_v14, 4 }
 0x129   :  { %v99_v16 = vadd.f32 %v98_v15, %v97_v14 }
 0x12b   :  { %v100_v17 = vrot.slane %v99_v16, 2 }
 0x12d   :  { %v101_v18 = vadd.f32 %v100_v17, %v99_v16 }
 0x12f   :  { %v102_v19 = vrot.slane %v101_v18, 1 }
 0x131   :  { %v103_v20 = vadd.f32 %v102_v19, %v101_v18 }
 0x133   :  { %139 = vpush %v103_v20 }
 0x164   :  { %s140_s2 = spop %139 }
 0x165   :  { %v112_v21 = vstv %s140_s2 }
 0x166   :  { %113 = vst [vmem:[#allocation6] sm:$0xff] %v112_v21 }
 0x167   :  { %180 = shalt.err (!%p177_p12)
}
 0x168   :  { %s181_s9 = scalar_lea.hbm %s260_s4, 128 }
 0x169   :  { %p182_p13 = scmp.ne.s32.totalorder %s260_s4, %s181_s9  ;;  %p185_p0 = scmp.lt.u32.totalorder %s181_s9, %s260_s4 }
 0x16b   :  { %p187_p1 = pnand %p185_p0, %p182_p13 }
 0x16d   :  { %190 = shalt.err (!%p187_p1)
}
 0x16e   :  { %123 = dma.vmem_to_hbm [thread:$0]  %s121_s1, 128, %s260_s4, [#allocation5]  }
 0x16f   :  { %193 = dma.done.wait [#allocation5], 128  }
 0x170   :  { %194 = vsyncadd [#allocation5], 4294967168 }
 0x171   :  { %127 = vsyncpa [#allocation4], 1 }
 0x172   :  { %128 = vsyncpa [#allocation5], 1 }

</bundles_post_ra>
